<compile_context>
chip_gen: v7x
topology: tpu7x:2x2x1
jax: 0.10.0
libtpu: 0.0.40
codegen_flags: <defaults>
</compile_context>

<pallas_src>
import functools

import jax
import jax.numpy as jnp
from jax import lax
from jax.experimental import pallas as pl
from jax.experimental.pallas import tpu as pltpu


def _policy_head_kernel(x_ref, w_ref, b_ref, o_ref):
    # x_ref: (TB, d_in), w_ref: (d_out, d_in)  [PyTorch layout],
    # b_ref: (1, d_out), o_ref: (TB, d_out)
    act = lax.dot_general(
        x_ref[...], w_ref[...],
        dimension_numbers=(((1,), (1,)), ((), ())),   # contract d_in with d_in
        preferred_element_type=jnp.float32,
        precision=lax.Precision.HIGHEST,
    )
    act = act + b_ref[...]                            # broadcast (1, d_out) over rows
    o_ref[...] = jnp.tanh(act).astype(o_ref.dtype)


def _round_up(x: int, m: int) -> int:
    return ((x + m - 1) // m) * m


@functools.partial(jax.jit, static_argnames=("block_b",))
def deterministic_policy_head(x, weight, bias, *, block_b=8192):
    """Pallas equivalent of DeterministicPolicyHead.forward.

    x:      (B, input_dim)            float32
    weight: (output_dim, input_dim)   PyTorch nn.Linear convention
    bias:   (output_dim,)
    returns (B, output_dim) = tanh(x @ weight.T + bias)
    """
    B, d_in = x.shape
    d_out = weight.shape[0]
    b2 = bias.reshape(1, d_out)       # cheap reshape, fused by jit

    # Batch tiling:
    #  * small B -> single grid step (launch/pipeline overhead dominates here;
    #    a fused XLA matmul+tanh would also be fine at these sizes).
    #  * large B -> big tiles (multiple of 8 sublanes, capped at block_b),
    #    with at least 2 grid steps so the "parallel" axis can use both
    #    TensorCores on v7x.
    if B <= 2048:
        tb = B
    else:
        tb = min(block_b, _round_up(pl.cdiv(B, 2), 8))
    grid = (pl.cdiv(B, tb),)

    # Note on partial final tile (B % tb != 0): Pallas masks the out-of-bound
    # stores, and tanh of the garbage rows read past the end of x is bounded,
    # so real output rows cannot be corrupted.  Do not "fix" this by removing
    # the mask.
    return pl.pallas_call(
        _policy_head_kernel,
        out_shape=jax.ShapeDtypeStruct((B, d_out), x.dtype),
        grid=grid,
        in_specs=[
            pl.BlockSpec((tb, d_in), lambda i: (i, 0)),       # x tile (streamed)
            pl.BlockSpec((d_out, d_in), lambda i: (0, 0)),    # weight, VMEM-resident
            pl.BlockSpec((1, d_out), lambda i: (0, 0)),       # bias, VMEM-resident
        ],
        out_specs=pl.BlockSpec((tb, d_out), lambda i: (i, 0)),
        compiler_params=pltpu.CompilerParams(
            dimension_semantics=("parallel",)),
    )(x, weight, b2)


if __name__ == "__main__":
    key = jax.random.PRNGKey(0)
    k_x, k_w, k_b, k_x2 = jax.random.split(key, 4)

    batch, input_dim, output_dim = 2, 32, 8

    # Deterministic parameter init mirroring uniform_(-0.003, 0.003)
    weight = jax.random.uniform(k_w, (output_dim, input_dim),
                                minval=-0.003, maxval=0.003,
                                dtype=jnp.float32)
    bias = jax.random.uniform(k_b, (output_dim,),
                              minval=-0.003, maxval=0.003,
                              dtype=jnp.float32)

    # Small-batch path (single grid step, full-array blocks)
    x = jax.random.normal(k_x, (batch, input_dim), dtype=jnp.float32)
    out = jax.block_until_ready(deterministic_policy_head(x, weight, bias))
    ref = jnp.tanh(x @ weight.T + bias)
    assert out.shape == (batch, output_dim)
    assert jnp.allclose(out, ref, atol=1e-6), "mismatch vs reference (small batch)"

    # Tiled-batch path (>=2 grid steps, weight/bias stay VMEM-resident)
    big_b = 4096
    x_big = jax.random.normal(k_x2, (big_b, input_dim), dtype=jnp.float32)
    out_big = jax.block_until_ready(
        deterministic_policy_head(x_big, weight, bias))
    ref_big = jnp.tanh(x_big @ weight.T + bias)
    assert out_big.shape == (big_b, output_dim)
    assert jnp.allclose(out_big, ref_big, atol=1e-6), "mismatch vs reference (tiled batch)"

    print("KERNEL_OK")
</pallas_src>

<mosaic_0001>
module attributes {stable_mosaic.version = 11 : i64} {
  func.func @_policy_head_kernel(%arg0: i32, %arg1: memref<2x32xf32, #tpu.memory_space<vmem>>, %arg2: memref<8x32xf32, #tpu.memory_space<vmem>>, %arg3: memref<1x8xf32, #tpu.memory_space<vmem>>, %arg4: memref<2x8xf32, #tpu.memory_space<vmem>>) attributes {dimension_semantics = [#tpu.dimension_semantics<parallel>], iteration_bounds = array<i64: 1>, scalar_prefetch = 0 : i64, scratch_operands = 0 : i64, tpu.core_type = #tpu.core_type<tc>, window_params = [{transform_indices = @transform_0, window_bounds = array<i64: 2, 32>}, {pipeline_mode = #tpu.pipeline_mode<synchronous>, transform_indices = @transform_1, window_bounds = array<i64: 8, 32>}, {pipeline_mode = #tpu.pipeline_mode<synchronous>, transform_indices = @transform_2, window_bounds = array<i64: 1, 8>}, {transform_indices = @transform_3, window_bounds = array<i64: 2, 8>}]} {
    %c0 = arith.constant 0 : index
    %c0_0 = arith.constant 0 : index
    %0 = vector.load %arg1[%c0, %c0_0] : memref<2x32xf32, #tpu.memory_space<vmem>>, vector<2x32xf32>
    %c0_1 = arith.constant 0 : index
    %c0_2 = arith.constant 0 : index
    %1 = vector.load %arg2[%c0_1, %c0_2] : memref<8x32xf32, #tpu.memory_space<vmem>>, vector<8x32xf32>
    %cst = arith.constant dense<0.000000e+00> : vector<2x8xf32>
    %2 = tpu.matmul %0, %1, %cst {dimension_numbers = #tpu.dot_dimension_numbers<[1], [1], [0], [0], [0, 0, 1, 0], [], []>, precision = #tpu.contract_precision<fp32>} : vector<2x32xf32>, vector<8x32xf32>, vector<2x8xf32> -> vector<2x8xf32>
    %c0_3 = arith.constant 0 : index
    %c0_4 = arith.constant 0 : index
    %3 = vector.load %arg3[%c0_3, %c0_4] : memref<1x8xf32, #tpu.memory_space<vmem>>, vector<1x8xf32>
    %4 = vector.broadcast %3 : vector<1x8xf32> to vector<2x8xf32>
    %5 = arith.addf %2, %4 : vector<2x8xf32>
    %6 = math.tanh %5 : vector<2x8xf32>
    %c0_5 = arith.constant 0 : index
    %c0_6 = arith.constant 0 : index
    %7 = vector.load %arg4[%c0_5, %c0_6] : memref<2x8xf32, #tpu.memory_space<vmem>>, vector<2x8xf32>
    tpu.vector_store %arg4[%c0_5, %c0_6], %6 {strides = array<i32>} : memref<2x8xf32, #tpu.memory_space<vmem>>, vector<2x8xf32>,
    return
  }
  func.func @transform_0(%arg0: i32) -> (i32, i32) {
    %c0_i32 = arith.constant 0 : i32
    %c0_i32_0 = arith.constant 0 : i32
    return %arg0, %c0_i32 : i32, i32
  }
  func.func @transform_1(%arg0: i32) -> (i32, i32) {
    %c0_i32 = arith.constant 0 : i32
    %c0_i32_0 = arith.constant 0 : i32
    %c0_i32_1 = arith.constant 0 : i32
    return %c0_i32, %c0_i32_0 : i32, i32
  }
  func.func @transform_2(%arg0: i32) -> (i32, i32) {
    %c0_i32 = arith.constant 0 : i32
    %c0_i32_0 = arith.constant 0 : i32
    %c0_i32_1 = arith.constant 0 : i32
    return %c0_i32, %c0_i32_0 : i32, i32
  }
  func.func @transform_3(%arg0: i32) -> (i32, i32) {
    %c0_i32 = arith.constant 0 : i32
    %c0_i32_0 = arith.constant 0 : i32
    return %arg0, %c0_i32 : i32, i32
  }
}

</mosaic_0001>

<bundles_post_ra>
// kernel: deterministic_policy_head.1
= control target key start
LH: loop header
LB: loop body
LE: loop exit
PB: predicated region body
PF: predicated region fallthrough
CT: control target
= control target key end

     0   :  { %8 = vsyncpa [#allocation3], 0  ;;  %s674_s0 = inlined_call_operand.vmem [shape: f32[2,32], index: 0, kind: input, shape index: {}]   ;;  %s675_s1 = inlined_call_operand.hbm [shape: f32[8,32], index: 1, kind: input, shape index: {}]   ;;  %s676_s2 = inlined_call_operand.vmem [shape: f32[1,8], index: 2, kind: input, shape index: {}]   ;;  %s677_s3 = inlined_call_operand.hbm [shape: f32[2,8], index: 3, kind: output, shape index: {}]  }
   0x1   :  { %9 = vsyncpa [#allocation4], 0  ;;  %s614_s12 = smov [#allocation2]   ;;  %s566_s16 = scalar_lea.hbm %s675_s1, 128 }
   0x2   :  { %s18_s13 = sshll.u32 %s614_s12, 4  ;;  %p567_p0 = scmp.ne.s32.totalorder %s675_s1, %s566_s16  ;;  %s19_s13 = int_to_ptr.vmem [resolvable:$true] %s18_s13 }
   0x3   :  { %p570_p1 = scmp.lt.u32.totalorder %s566_s16, %s675_s1 }
   0x5   :  { %p572_p2 = pnand %p570_p1, %p567_p0 }
   0x7   :  { %575 = shalt.err (!%p572_p2)
}
   0x8   :  { %s576_s21 = scalar_lea.vmem %s19_s13, 128  ;;  %p581_p4 = scmp.lt.s32.totalorder %s19_s13, %s19_s13 }
   0x9   :  { %p577_p3 = scmp.ne.s32.totalorder %s19_s13, %s576_s21  ;;  %p582_p5 = scmp.lt.s32.totalorder %s576_s21, %s576_s21 }
   0xb   :  { %p583_p6 = por %p582_p5, %p581_p4 }
   0xd   :  { %p584_p7 = pnand %p583_p6, %p577_p3 }
   0xf   :  { %587 = shalt.err (!%p584_p7)
}
  0x10   :  { %21 = dma.hbm_to_vmem [thread:$0]  %s675_s1, 128, %s19_s13, [#allocation3]  }
  0x11   :  { %610 = dma.done.wait [#allocation3], 128  }
  0x12   :  { %611 = vsyncadd [#allocation3], 4294967168  ;;  %v615_v0 = vmov 0.0   ;;  %vm616_vm0 = vmmov 0   ;;  %vm36_vm1 = vcmask 261120   ;;  %v28_v1 = vld [vmem:[#allocation2] sm:$0xff] }
  0x13   :  { %535 = vmatprep.subr.mxu0 %v615_v0  ;;  %520 = vmatprep.subr.mxu1 %v615_v0  ;;  %v27_v2 = vld [vmem:[%s674_s0] sm:$0x3]  ;;  %v41_v3 = vsel %vm36_vm1, %v28_v1, 0  ;;  %s617_s26 = smov [#allocation5]   ;;  %vm490_vm2 = vcmask 58368  }
  0x14   :  { %537 = vmatprep.mubr.msk.f32.mxu0 %vm616_vm0, %v615_v0  ;;  %522 = vmatprep.mubr.msk.f32.mxu1 %vm616_vm0, %v615_v0  ;;  %v38_v4 = vsel %vm36_vm1, %v27_v2, 0  ;;  %v44_v5 = vand.u32 4294901760, %v41_v3  ;;  %v507_v17 = vld [vmem:[%s676_s2] ss:$0 sm:$0xff]  ;;  %s498_s27 = sshll.u32 %s617_s26, 4  ;;  %s499_s27 = int_to_ptr.vmem [resolvable:$true] %s498_s27 }
  0x15   :  { %v109_v6 = vand.u32 4294901760, %v38_v4  ;;  %s588_s28 = scalar_lea.vmem %s499_s27, 32  ;;  %p593_p9 = scmp.lt.s32.totalorder %s499_s27, %s499_s27 }
  0x16   :  { %v121_v7 = vsub.f32 %v41_v3, %v44_v5  ;;  %536 = vmatpush3.xpose.msra.mxu0 %v44_v5  ;;  %521 = vmatpush3.xpose.msra.mxu1 %v44_v5  ;;  %p589_p8 = scmp.ne.s32.totalorder %s499_s27, %s588_s28  ;;  %p594_p10 = scmp.lt.s32.totalorder %s588_s28, %s588_s28 }
  0x17   :  { %v110_v8 = vsub.f32 %v38_v4, %v109_v6  ;;  %525 = vmatprep.subr.mxu1 %v615_v0  ;;  %540 = vmatprep.subr.mxu0 %v615_v0 }
  0x18   :  { %v122_v10 = vand.u32 4294901760, %v121_v7  ;;  %p595_p11 = por %p594_p10, %p593_p9 }
  0x19   :  { %v111_v9 = vand.u32 4294901760, %v110_v8 }
  0x1a   :  { %v123_v12 = vsub.f32 %v121_v7, %v122_v10  ;;  %p596_p12 = pnand %p595_p11, %p589_p8 }
  0x1b   :  { %538 = vmatmul.mubr.f32.vlgmr.msra.gmra.mrb[0].mxu0 %v111_v9  ;;  %v112_v11 = vsub.f32 %v110_v8, %v111_v9 }
  0x1c   :  { %541 = vmatpush3.xpose.msra.mxu0 %v122_v10  ;;  %542 = vmatprep.mubr.msk.f32.mxu0 %vm616_vm0, %v615_v0  ;;  %v124_v14 = vand.u32 4294901760, %v123_v12 }
  0x1d   :  { %v113_v13 = vand.u32 4294901760, %v112_v11  ;;  %545 = vmatprep.subr.mxu0 %v615_v0 }
  0x1f   :  { %523 = vmatmul.mubr.f32.vlgmr.msra.gmra.mrb[0].mxu1 %v113_v13 }
  0x20   :  { %526 = vmatpush3.xpose.msra.mxu1 %v124_v14  ;;  %527 = vmatprep.mubr.msk.f32.mxu1 %vm616_vm0, %v615_v0 }
  0x21   :  { %530 = vmatprep.subr.mxu1 %v615_v0 }
  0x23   :  { %543 = vmatmul.mubr.f32.vlgmr.msra.gmra.mrb[0].mxu0 %v109_v6 }
  0x24   :  { %546 = vmatpush3.xpose.msra.mxu0 %v44_v5  ;;  %547 = vmatprep.mubr.msk.f32.mxu0 %vm616_vm0, %v615_v0 }
  0x27   :  { %528 = vmatmul.mubr.f32.vlgmr.msra.gmra.mrb[0].mxu1 %v109_v6 }
  0x28   :  { %531 = vmatpush3.xpose.msra.mxu1 %v121_v7  ;;  %532 = vmatprep.mubr.msk.f32.mxu1 %vm616_vm0, %v615_v0 }
  0x2b   :  { %548 = vmatmul.mubr.f32.vlgmr.msra.gmra.mrb[0].mxu0 %v109_v6 }
  0x2f   :  { %533 = vmatmul.mubr.f32.vlgmr.msra.gmra.mrb[0].mxu1 %v110_v8 }
  0xfe   :  { %v485_v15 = vpop.f32.mrb[0].mxu0 }
  0xff   :  { %v549_v16 = vpop.f32.mrb[1].mxu0 }
 0x102   :  { %v265_v18 = vpop.f32.mrb[0].mxu1 }
 0x103   :  { %v550_v19 = vadd.f32 %v507_v17, %v265_v18  ;;  %v534_v20 = vpop.f32.mrb[1].mxu1 }
 0x105   :  { %v551_v21 = vadd.f32 %v550_v19, %v485_v15 }
 0x107   :  { %564 = vtanh.f32 %v551_v21 }
 0x111   :  { %v565_v22 = vpop.eup %564 }
 0x112   :  { %491 = vst.msk [vmem:[#allocation5] sm:$0x3] %vm490_vm2, %v565_v22 }
 0x113   :  { %599 = shalt.err (!%p596_p12)
}
 0x114   :  { %s600_s30 = scalar_lea.hbm %s677_s3, 32 }
 0x115   :  { %p601_p13 = scmp.ne.s32.totalorder %s677_s3, %s600_s30  ;;  %p604_p0 = scmp.lt.u32.totalorder %s600_s30, %s677_s3 }
 0x117   :  { %p606_p1 = pnand %p604_p0, %p601_p13 }
 0x119   :  { %609 = shalt.err (!%p606_p1)
}
 0x11a   :  { %501 = dma.vmem_to_hbm [thread:$0]  %s499_s27, 32, %s677_s3, [#allocation4]  }
 0x11b   :  { %612 = dma.done.wait [#allocation4], 32  }
 0x11c   :  { %613 = vsyncadd [#allocation4], 4294967264 }
 0x11d   :  { %505 = vsyncpa [#allocation3], 1 }
 0x11e   :  { %506 = vsyncpa [#allocation4], 1 }

</bundles_post_ra>
